<compile_context>
chip_gen: v7x
topology: tpu7x:2x2x1
jax: 0.10.0
libtpu: 0.0.40
codegen_flags: <defaults>
</compile_context>

<pallas_src>
import jax
import jax.numpy as jnp
from jax import lax
from jax.experimental import pallas as pl
from jax.experimental.pallas import tpu as pltpu

E = 32      # embedding_dim
H = 32      # hidden_dim
L = 8       # label_dim
NMAX = 8    # max children per node (padded)
MULTILABEL = False   # baked in at trace time, mirrors the PyTorch flag

assert E == H, "fused [x | child_h] LHS packing below assumes E == H"


# ------------------------------ Pallas kernel -------------------------------

def _tree_kernel(child_ids_ref,                     # SMEM (NMAX, N) int32
                 x_ref,                             # VMEM (N, E)
                 w_ref,                             # VMEM (E+H, 4H) = [[Wx],[Uh]]
                 b_ref,                             # VMEM (1, 4H)   = bW + bU
                 wl_ref, bl_ref,                    # VMEM (H, L), (1, L)
                 state_ref,                         # OUT  (n_state, 2H) [c | h]
                 logits_ref):                       # OUT  (1, L)
    n = x_ref.shape[0]
    nmax = child_ids_ref.shape[0]

    # Zero all state rows once.  Padded child ids point at the all-zero row n,
    # which contributes nothing (matches PyTorch's zero child state).
    state_ref[...] = jnp.zeros_like(state_ref)

    w = w_ref[...]                                  # (E+H, 4H), loop-invariant
    b = b_ref[...]                                  # (1, 4H)
    zpad = jnp.zeros((1, H), jnp.float32)
    lane = lax.broadcasted_iota(jnp.int32, (nmax, 2 * H), 1)
    h_mask = lane >= H                              # keep h lanes, zero c lanes

    def node_step(i, carry):
        # --- gather children + pack the fused (NMAX+1, E+H) LHS -------------
        x_row = x_ref[pl.ds(i, 1), :]                               # (1, E)
        top = jnp.concatenate([x_row, zpad], axis=1)                # [x | 0]
        ch = jnp.concatenate(
            [state_ref[pl.ds(child_ids_ref[m, i], 1), :] for m in range(nmax)],
            axis=0)                                                 # (NMAX, 2H) [c|h]
        lhs = jnp.concatenate([top, jnp.where(h_mask, ch, 0.0)], axis=0)

        # --- one MXU pass: row 0 -> x@Wx, rows 1.. -> child_h@Uh ------------
        g = jnp.dot(lhs, w, preferred_element_type=jnp.float32)     # (NMAX+1, 4H)

        # i/o/u gates use z = wx + sum_k(h_k @ Uh) + (bW + bU)
        z = jnp.sum(g, axis=0, keepdims=True) + b                   # (1, 4H)
        sig_z = jax.nn.sigmoid(z)                                   # full-vreg EUP
        tanh_z = jnp.tanh(z)
        gi = sig_z[:, 0:H]
        go = sig_z[:, 2 * H:3 * H]
        gu = tanh_z[:, 3 * H:4 * H]

        # f gate per child: sigmoid(Wf(x) + Uf(h_k)), biases applied per row.
        gf = jax.nn.sigmoid(g[1:, H:2 * H] + g[0:1, H:2 * H] + b[:, H:2 * H])
        cc = ch[:, 0:H]                                             # children c

        c = gi * gu + jnp.sum(gf * cc, axis=0, keepdims=True)       # (1, H)
        h = go * jnp.tanh(c)                                        # (1, H)
        state_ref[pl.ds(i, 1), :] = jnp.concatenate([c, h], axis=1)  # [c | h]
        return carry

    lax.fori_loop(0, n, node_step, 0)

    # --- root classifier (root is the last node in post-order) --------------
    root = state_ref[pl.ds(n - 1, 1), :]                            # (1, 2H)
    h_root = root[:, H:2 * H]
    out = jnp.dot(h_root, wl_ref[...], preferred_element_type=jnp.float32) + bl_ref[...]
    if MULTILABEL:
        out = jax.nn.sigmoid(out)
    logits_ref[...] = out


@jax.jit
def tree_forward(child_ids, x, w_fused, b_fused, Wl, bl):
    n = x.shape[0]
    n_state = max(8, -(-(n + 1) // 8) * 8)      # row n = zero slot, pad to x8
    const = lambda g, cid: (0, 0)               # everything VMEM-resident
    grid_spec = pltpu.PrefetchScalarGridSpec(
        num_scalar_prefetch=1,
        grid=(1,),                              # node loop runs inside the kernel
        in_specs=[
            pl.BlockSpec((n, E), const),            # x
            pl.BlockSpec((E + H, 4 * H), const),    # fused [Wx; Uh]
            pl.BlockSpec((1, 4 * H), const),        # bW + bU
            pl.BlockSpec((H, L), const),            # Wl
            pl.BlockSpec((1, L), const),            # bl
        ],
        out_specs=(
            pl.BlockSpec((n_state, 2 * H), const),  # packed [c | h] per node
            pl.BlockSpec((1, L), const),            # root hidden2label output
        ),
    )
    return pl.pallas_call(
        _tree_kernel,
        out_shape=(jax.ShapeDtypeStruct((n_state, 2 * H), jnp.float32),
                   jax.ShapeDtypeStruct((1, L), jnp.float32)),
        grid_spec=grid_spec,
        compiler_params=pltpu.CompilerParams(
            dimension_semantics=("arbitrary",)),
    )(child_ids, x, w_fused, b_fused, Wl, bl)


# ------------------------------- parameters --------------------------------

def _linear_init(key, fan_in, fan_out):
    """PyTorch nn.Linear default: U(-1/sqrt(fan_in), 1/sqrt(fan_in)).
    Weight already transposed to (fan_in, fan_out); bias (1, fan_out)."""
    k = 1.0 / jnp.sqrt(jnp.float32(fan_in))
    kw, kb = jax.random.split(key)
    w = jax.random.uniform(kw, (fan_in, fan_out), jnp.float32, -k, k)
    b = jax.random.uniform(kb, (1, fan_out), jnp.float32, -k, k)
    return w, b


def init_params(key):
    keys = jax.random.split(key, 9)
    # gate order [i, f, o, u]
    Wi, bWi = _linear_init(keys[0], E, H)
    Wf, bWf = _linear_init(keys[1], E, H)
    Wo, bWo = _linear_init(keys[2], E, H)
    Wu, bWu = _linear_init(keys[3], E, H)
    Ui, bUi = _linear_init(keys[4], H, H)
    Uf, bUf = _linear_init(keys[5], H, H)
    Uo, bUo = _linear_init(keys[6], H, H)
    Uu, bUu = _linear_init(keys[7], H, H)
    Wl, bl = _linear_init(keys[8], H, L)
    Wx = jnp.concatenate([Wi, Wf, Wo, Wu], axis=1)      # (E, 4H)
    bW = jnp.concatenate([bWi, bWf, bWo, bWu], axis=1)  # (1, 4H)
    Uh = jnp.concatenate([Ui, Uf, Uo, Uu], axis=1)      # (H, 4H)
    bU = jnp.concatenate([bUi, bUf, bUo, bUu], axis=1)  # (1, 4H)
    return dict(Wx=Wx, bW=bW, Uh=Uh, bU=bU, Wl=Wl, bl=bl,
                Wfused=jnp.concatenate([Wx, Uh], axis=0),   # (E+H, 4H)
                bfused=bW + bU)                             # (1, 4H)


# ------------------------------ tree handling -------------------------------

class DocTreeNode:
    def __init__(self, embedding=None, children=None):
        self.embedding = embedding          # (E,) array or None
        self.children = children or []
        self.num_children = len(self.children)
        self.state = None


def _flatten(tree, nmax=NMAX):
    """Post-order topological sort (children before parents, root last)."""
    order = []

    def rec(node):
        for c in node.children:
            rec(c)
        node._topo = len(order)
        order.append(node)

    rec(tree)
    n = len(order)
    x_rows = []
    child_tbl = [[n] * n for _ in range(nmax)]   # default: point at zero row n
    for idx, node in enumerate(order):
        assert node.num_children <= nmax, "increase NMAX"
        if node.embedding is not None:
            x_rows.append(jnp.asarray(node.embedding, jnp.float32).reshape(E))
        else:
            x_rows.append(jnp.zeros((E,), jnp.float32))
        for m, c in enumerate(node.children):
            child_tbl[m][idx] = c._topo
    x = jnp.stack(x_rows, axis=0)                        # (N, E)
    child_ids = jnp.asarray(child_tbl, dtype=jnp.int32)  # (NMAX, N), long axis last
    return order, x, child_ids


def forward(tree, params):
    """StructureTreeLSTM.forward — whole tree in one pallas_call."""
    order, x, child_ids = _flatten(tree)
    states, logits = tree_forward(child_ids, x, params["Wfused"], params["bfused"],
                                  params["Wl"], params["bl"])
    # Side-effect parity with the PyTorch module: tree.state = (c, h) per node.
    for node in order:
        node.state = (states[node._topo, 0:H].reshape(1, H),
                      states[node._topo, H:2 * H].reshape(1, H))
    return logits[0]                                     # (L,)


# ----------------------------- pure-JAX reference ---------------------------

def _ref_unit(x, child_c, child_h, p):
    h_sum = jnp.sum(child_h, axis=0, keepdims=True)
    wx = x @ p["Wx"] + p["bW"]
    us = h_sum @ p["Uh"] + p["bU"]
    uc = child_h @ p["Uh"] + p["bU"]
    i = jax.nn.sigmoid(wx[:, 0:H] + us[:, 0:H])
    o = jax.nn.sigmoid(wx[:, 2 * H:3 * H] + us[:, 2 * H:3 * H])
    u = jnp.tanh(wx[:, 3 * H:4 * H] + us[:, 3 * H:4 * H])
    f = jax.nn.sigmoid(wx[:, H:2 * H] + uc[:, H:2 * H])
    c = i * u + jnp.sum(f * child_c, axis=0, keepdims=True)
    h = o * jnp.tanh(c)
    return c, h


def forward_ref(tree, params):
    states = {}

    def rec(node):
        for ch in node.children:
            rec(ch)
        x = (jnp.asarray(node.embedding, jnp.float32).reshape(1, E)
             if node.embedding is not None else jnp.zeros((1, E), jnp.float32))
        if node.num_children == 0:
            cc = jnp.zeros((1, H), jnp.float32)
            hh = jnp.zeros((1, H), jnp.float32)
        else:
            cc = jnp.concatenate([states[id(c)][0] for c in node.children], 0)
            hh = jnp.concatenate([states[id(c)][1] for c in node.children], 0)
        states[id(node)] = _ref_unit(x, cc, hh, params)
        out = (states[id(node)][1] @ params["Wl"] + params["bl"])[0]
        if MULTILABEL:
            out = jax.nn.sigmoid(out)
        return out

    return rec(tree)


# ---------------------------------- main ------------------------------------

if __name__ == "__main__":
    key = jax.random.PRNGKey(0)
    kparams, kdata = jax.random.split(key)
    params = init_params(kparams)

    # Small deterministic document tree:
    #   root (embedding)
    #   ├── n1 (embedding) ── [leaf_a, leaf_b]
    #   └── n2 (no embedding -> zeros) ── [leaf_c]
    embs = jax.random.normal(kdata, (5, E), jnp.float32)
    leaf_a = DocTreeNode(embedding=embs[0])
    leaf_b = DocTreeNode(embedding=embs[1])
    leaf_c = DocTreeNode(embedding=embs[2])
    n1 = DocTreeNode(embedding=embs[3], children=[leaf_a, leaf_b])
    n2 = DocTreeNode(embedding=None, children=[leaf_c])
    root = DocTreeNode(embedding=embs[4], children=[n1, n2])

    out = jax.block_until_ready(forward(root, params))

    ref = jax.block_until_ready(forward_ref(
        DocTreeNode(embedding=embs[4], children=[
            DocTreeNode(embedding=embs[3],
                        children=[DocTreeNode(embedding=embs[0]),
                                  DocTreeNode(embedding=embs[1])]),
            DocTreeNode(embedding=None,
                        children=[DocTreeNode(embedding=embs[2])]),
        ]), params))

    assert out.shape == (L,)
    assert jnp.allclose(out, ref, atol=1e-4, rtol=1e-4), (out, ref)
    print("KERNEL_OK")
</pallas_src>

<mosaic_0001>
module attributes {stable_mosaic.version = 11 : i64} {
  func.func @_tree_kernel(%arg0: i32, %arg1: memref<8x6xi32, #tpu.memory_space<smem>>, %arg2: memref<6x32xf32, #tpu.memory_space<vmem>>, %arg3: memref<64x128xf32, #tpu.memory_space<vmem>>, %arg4: memref<1x128xf32, #tpu.memory_space<vmem>>, %arg5: memref<32x8xf32, #tpu.memory_space<vmem>>, %arg6: memref<1x8xf32, #tpu.memory_space<vmem>>, %arg7: memref<8x64xf32, #tpu.memory_space<vmem>>, %arg8: memref<1x8xf32, #tpu.memory_space<vmem>>) attributes {dimension_semantics = [#tpu.dimension_semantics<arbitrary>], iteration_bounds = array<i64: 1>, scalar_prefetch = 1 : i64, scratch_operands = 0 : i64, tpu.core_type = #tpu.core_type<tc>, window_params = [{pipeline_mode = #tpu.pipeline_mode<synchronous>, transform_indices = @transform_0, window_bounds = array<i64: 6, 32>}, {pipeline_mode = #tpu.pipeline_mode<synchronous>, transform_indices = @transform_1, window_bounds = array<i64: 64, 128>}, {pipeline_mode = #tpu.pipeline_mode<synchronous>, transform_indices = @transform_2, window_bounds = array<i64: 1, 128>}, {pipeline_mode = #tpu.pipeline_mode<synchronous>, transform_indices = @transform_3, window_bounds = array<i64: 32, 8>}, {pipeline_mode = #tpu.pipeline_mode<synchronous>, transform_indices = @transform_4, window_bounds = array<i64: 1, 8>}, {pipeline_mode = #tpu.pipeline_mode<synchronous>, transform_indices = @transform_5, window_bounds = array<i64: 8, 64>}, {pipeline_mode = #tpu.pipeline_mode<synchronous>, transform_indices = @transform_6, window_bounds = array<i64: 1, 8>}]} {
    %cst = arith.constant 0.000000e+00 : f32
    %0 = vector.broadcast %cst : f32 to vector<8x64xf32>
    %c0 = arith.constant 0 : index
    %c0_0 = arith.constant 0 : index
    %1 = vector.load %arg7[%c0, %c0_0] : memref<8x64xf32, #tpu.memory_space<vmem>>, vector<8x64xf32>
    tpu.vector_store %arg7[%c0, %c0_0], %0 {strides = array<i32>} : memref<8x64xf32, #tpu.memory_space<vmem>>, vector<8x64xf32>,
    %c0_1 = arith.constant 0 : index
    %c0_2 = arith.constant 0 : index
    %2 = vector.load %arg3[%c0_1, %c0_2] : memref<64x128xf32, #tpu.memory_space<vmem>>, vector<64x128xf32>
    %c0_3 = arith.constant 0 : index
    %c0_4 = arith.constant 0 : index
    %3 = vector.load %arg4[%c0_3, %c0_4] : memref<1x128xf32, #tpu.memory_space<vmem>>, vector<1x128xf32>
    %cst_5 = arith.constant 0.000000e+00 : f32
    %4 = vector.broadcast %cst_5 : f32 to vector<1x32xf32>
    %5 = tpu.iota {dimensions = array<i32: 1>} : vector<8x64xi32>
    %c32_i32 = arith.constant 32 : i32
    %6 = vector.broadcast %c32_i32 : i32 to vector<8x64xi32>
    %7 = arith.cmpi sge, %5, %6 : vector<8x64xi32>
    %c0_i32 = arith.constant 0 : i32
    %c6_i32 = arith.constant 6 : i32
    %8 = arith.addi %c0_i32, %c6_i32 : i32
    %c1_i32 = arith.constant 1 : i32
    scf.for %arg9 = %c0_i32 to %8 step %c1_i32  : i32 {
      %16 = arith.index_cast %arg9 : i32 to index
      %c0_15 = arith.constant 0 : index
      %17 = vector.load %arg2[%16, %c0_15] : memref<6x32xf32, #tpu.memory_space<vmem>>, vector<1x32xf32>
      %18 = tpu.concatenate %17, %4 in 1 : vector<1x32xf32>, vector<1x32xf32> -> vector<1x64xf32>
      %c0_16 = arith.constant 0 : index
      %19 = arith.index_cast %arg9 : i32 to index
      %20 = memref.load %arg1[%c0_16, %19] : memref<8x6xi32, #tpu.memory_space<smem>>
      %21 = arith.index_cast %20 : i32 to index
      %c0_17 = arith.constant 0 : index
      %22 = vector.load %arg7[%21, %c0_17] : memref<8x64xf32, #tpu.memory_space<vmem>>, vector<1x64xf32>
      %c1 = arith.constant 1 : index
      %23 = arith.index_cast %arg9 : i32 to index
      %24 = memref.load %arg1[%c1, %23] : memref<8x6xi32, #tpu.memory_space<smem>>
      %25 = arith.index_cast %24 : i32 to index
      %c0_18 = arith.constant 0 : index
      %26 = vector.load %arg7[%25, %c0_18] : memref<8x64xf32, #tpu.memory_space<vmem>>, vector<1x64xf32>
      %c2 = arith.constant 2 : index
      %27 = arith.index_cast %arg9 : i32 to index
      %28 = memref.load %arg1[%c2, %27] : memref<8x6xi32, #tpu.memory_space<smem>>
      %29 = arith.index_cast %28 : i32 to index
      %c0_19 = arith.constant 0 : index
      %30 = vector.load %arg7[%29, %c0_19] : memref<8x64xf32, #tpu.memory_space<vmem>>, vector<1x64xf32>
      %c3 = arith.constant 3 : index
      %31 = arith.index_cast %arg9 : i32 to index
      %32 = memref.load %arg1[%c3, %31] : memref<8x6xi32, #tpu.memory_space<smem>>
      %33 = arith.index_cast %32 : i32 to index
      %c0_20 = arith.constant 0 : index
      %34 = vector.load %arg7[%33, %c0_20] : memref<8x64xf32, #tpu.memory_space<vmem>>, vector<1x64xf32>
      %c4 = arith.constant 4 : index
      %35 = arith.index_cast %arg9 : i32 to index
      %36 = memref.load %arg1[%c4, %35] : memref<8x6xi32, #tpu.memory_space<smem>>
      %37 = arith.index_cast %36 : i32 to index
      %c0_21 = arith.constant 0 : index
      %38 = vector.load %arg7[%37, %c0_21] : memref<8x64xf32, #tpu.memory_space<vmem>>, vector<1x64xf32>
      %c5_22 = arith.constant 5 : index
      %39 = arith.index_cast %arg9 : i32 to index
      %40 = memref.load %arg1[%c5_22, %39] : memref<8x6xi32, #tpu.memory_space<smem>>
      %41 = arith.index_cast %40 : i32 to index
      %c0_23 = arith.constant 0 : index
      %42 = vector.load %arg7[%41, %c0_23] : memref<8x64xf32, #tpu.memory_space<vmem>>, vector<1x64xf32>
      %c6 = arith.constant 6 : index
      %43 = arith.index_cast %arg9 : i32 to index
      %44 = memref.load %arg1[%c6, %43] : memref<8x6xi32, #tpu.memory_space<smem>>
      %45 = arith.index_cast %44 : i32 to index
      %c0_24 = arith.constant 0 : index
      %46 = vector.load %arg7[%45, %c0_24] : memref<8x64xf32, #tpu.memory_space<vmem>>, vector<1x64xf32>
      %c7 = arith.constant 7 : index
      %47 = arith.index_cast %arg9 : i32 to index
      %48 = memref.load %arg1[%c7, %47] : memref<8x6xi32, #tpu.memory_space<smem>>
      %49 = arith.index_cast %48 : i32 to index
      %c0_25 = arith.constant 0 : index
      %50 = vector.load %arg7[%49, %c0_25] : memref<8x64xf32, #tpu.memory_space<vmem>>, vector<1x64xf32>
      %51 = tpu.concatenate %22, %26, %30, %34, %38, %42, %46, %50 in 0 : vector<1x64xf32>, vector<1x64xf32>, vector<1x64xf32>, vector<1x64xf32>, vector<1x64xf32>, vector<1x64xf32>, vector<1x64xf32>, vector<1x64xf32> -> vector<8x64xf32>
      %cst_26 = arith.constant 0.000000e+00 : f32
      %52 = vector.broadcast %cst_26 : f32 to vector<8x64xf32>
      %53 = arith.select %7, %51, %52 : vector<8x64xi1>, vector<8x64xf32>
      %54 = tpu.concatenate %18, %53 in 0 : vector<1x64xf32>, vector<8x64xf32> -> vector<9x64xf32>
      %cst_27 = arith.constant dense<0.000000e+00> : vector<9x128xf32>
      %55 = tpu.matmul %54, %2, %cst_27 {dimension_numbers = #tpu.dot_dimension_numbers<[1], [0], [0], [1], [0, 0, 1, 1], [], []>} : vector<9x64xf32>, vector<64x128xf32>, vector<9x128xf32> -> vector<9x128xf32>
      %cst_28 = arith.constant dense<0.000000e+00> : vector<128xf32>
      %56 = vector.multi_reduction <add>, %55, %cst_28 [0] : vector<9x128xf32> to vector<128xf32>
      %57 = vector.shape_cast %56 : vector<128xf32> to vector<1x128xf32>
      %58 = arith.addf %57, %3 : vector<1x128xf32>
      %59 = arith.negf %58 : vector<1x128xf32>
      %60 = math.exp %59 : vector<1x128xf32>
      %cst_29 = arith.constant 1.000000e+00 : f32
      %61 = vector.broadcast %cst_29 : f32 to vector<1x128xf32>
      %62 = arith.addf %61, %60 : vector<1x128xf32>
      %63 = arith.divf %61, %62 : vector<1x128xf32>
      %64 = math.tanh %58 : vector<1x128xf32>
      %65 = vector.extract_strided_slice %63 {offsets = [0, 0], sizes = [1, 32], strides = [1, 1]} : vector<1x128xf32> to vector<1x32xf32>
      %66 = vector.extract_strided_slice %63 {offsets = [0, 64], sizes = [1, 32], strides = [1, 1]} : vector<1x128xf32> to vector<1x32xf32>
      %67 = vector.extract_strided_slice %64 {offsets = [0, 96], sizes = [1, 32], strides = [1, 1]} : vector<1x128xf32> to vector<1x32xf32>
      %68 = vector.extract_strided_slice %55 {offsets = [1, 32], sizes = [8, 32], strides = [1, 1]} : vector<9x128xf32> to vector<8x32xf32>
      %69 = vector.extract_strided_slice %55 {offsets = [0, 32], sizes = [1, 32], strides = [1, 1]} : vector<9x128xf32> to vector<1x32xf32>
      %70 = vector.broadcast %69 : vector<1x32xf32> to vector<8x32xf32>
      %71 = arith.addf %68, %70 : vector<8x32xf32>
      %72 = vector.extract_strided_slice %3 {offsets = [0, 32], sizes = [1, 32], strides = [1, 1]} : vector<1x128xf32> to vector<1x32xf32>
      %73 = vector.broadcast %72 : vector<1x32xf32> to vector<8x32xf32>
      %74 = arith.addf %71, %73 : vector<8x32xf32>
      %75 = arith.negf %74 : vector<8x32xf32>
      %76 = math.exp %75 : vector<8x32xf32>
      %cst_30 = arith.constant 1.000000e+00 : f32
      %77 = vector.broadcast %cst_30 : f32 to vector<8x32xf32>
      %78 = arith.addf %77, %76 : vector<8x32xf32>
      %79 = arith.divf %77, %78 : vector<8x32xf32>
      %80 = vector.extract_strided_slice %51 {offsets = [0, 0], sizes = [8, 32], strides = [1, 1]} : vector<8x64xf32> to vector<8x32xf32>
      %81 = arith.mulf %65, %67 : vector<1x32xf32>
      %82 = arith.mulf %79, %80 : vector<8x32xf32>
      %cst_31 = arith.constant dense<0.000000e+00> : vector<32xf32>
      %83 = vector.multi_reduction <add>, %82, %cst_31 [0] : vector<8x32xf32> to vector<32xf32>
      %84 = vector.shape_cast %83 : vector<32xf32> to vector<1x32xf32>
      %85 = arith.addf %81, %84 : vector<1x32xf32>
      %86 = math.tanh %85 : vector<1x32xf32>
      %87 = arith.mulf %66, %86 : vector<1x32xf32>
      %88 = tpu.concatenate %85, %87 in 1 : vector<1x32xf32>, vector<1x32xf32> -> vector<1x64xf32>
      %89 = arith.index_cast %arg9 : i32 to index
      %c0_32 = arith.constant 0 : index
      %90 = vector.load %arg7[%89, %c0_32] : memref<8x64xf32, #tpu.memory_space<vmem>>, vector<1x64xf32>
      tpu.vector_store %arg7[%89, %c0_32], %88 {strides = array<i32>} : memref<8x64xf32, #tpu.memory_space<vmem>>, vector<1x64xf32>,
    }
    %c6_i32_6 = arith.constant 6 : i32
    %c5 = arith.constant 5 : index
    %c0_7 = arith.constant 0 : index
    %9 = vector.load %arg7[%c5, %c0_7] : memref<8x64xf32, #tpu.memory_space<vmem>>, vector<1x64xf32>
    %10 = vector.extract_strided_slice %9 {offsets = [0, 32], sizes = [1, 32], strides = [1, 1]} : vector<1x64xf32> to vector<1x32xf32>
    %c0_8 = arith.constant 0 : index
    %c0_9 = arith.constant 0 : index
    %11 = vector.load %arg5[%c0_8, %c0_9] : memref<32x8xf32, #tpu.memory_space<vmem>>, vector<32x8xf32>
    %cst_10 = arith.constant dense<0.000000e+00> : vector<1x8xf32>
    %12 = tpu.matmul %10, %11, %cst_10 {dimension_numbers = #tpu.dot_dimension_numbers<[1], [0], [0], [1], [0, 0, 1, 1], [], []>} : vector<1x32xf32>, vector<32x8xf32>, vector<1x8xf32> -> vector<1x8xf32>
    %c0_11 = arith.constant 0 : index
    %c0_12 = arith.constant 0 : index
    %13 = vector.load %arg6[%c0_11, %c0_12] : memref<1x8xf32, #tpu.memory_space<vmem>>, vector<1x8xf32>
    %14 = arith.addf %12, %13 : vector<1x8xf32>
    %c0_13 = arith.constant 0 : index
    %c0_14 = arith.constant 0 : index
    %15 = vector.load %arg8[%c0_13, %c0_14] : memref<1x8xf32, #tpu.memory_space<vmem>>, vector<1x8xf32>
    tpu.vector_store %arg8[%c0_13, %c0_14], %14 {strides = array<i32>} : memref<1x8xf32, #tpu.memory_space<vmem>>, vector<1x8xf32>,
    return
  }
  func.func @transform_0(%arg0: i32, %arg1: memref<8x6xi32, #tpu.memory_space<smem>>) -> (i32, i32) {
    %c0_i32 = arith.constant 0 : i32
    %c0_i32_0 = arith.constant 0 : i32
    %c0_i32_1 = arith.constant 0 : i32
    return %c0_i32, %c0_i32_0 : i32, i32
  }
  func.func @transform_1(%arg0: i32, %arg1: memref<8x6xi32, #tpu.memory_space<smem>>) -> (i32, i32) {
    %c0_i32 = arith.constant 0 : i32
    %c0_i32_0 = arith.constant 0 : i32
    %c0_i32_1 = arith.constant 0 : i32
    return %c0_i32, %c0_i32_0 : i32, i32
  }
  func.func @transform_2(%arg0: i32, %arg1: memref<8x6xi32, #tpu.memory_space<smem>>) -> (i32, i32) {
    %c0_i32 = arith.constant 0 : i32
    %c0_i32_0 = arith.constant 0 : i32
    %c0_i32_1 = arith.constant 0 : i32
    return %c0_i32, %c0_i32_0 : i32, i32
  }
  func.func @transform_3(%arg0: i32, %arg1: memref<8x6xi32, #tpu.memory_space<smem>>) -> (i32, i32) {
    %c0_i32 = arith.constant 0 : i32
    %c0_i32_0 = arith.constant 0 : i32
    %c0_i32_1 = arith.constant 0 : i32
    return %c0_i32, %c0_i32_0 : i32, i32
  }
  func.func @transform_4(%arg0: i32, %arg1: memref<8x6xi32, #tpu.memory_space<smem>>) -> (i32, i32) {
    %c0_i32 = arith.constant 0 : i32
    %c0_i32_0 = arith.constant 0 : i32
    %c0_i32_1 = arith.constant 0 : i32
    return %c0_i32, %c0_i32_0 : i32, i32
  }
  func.func @transform_5(%arg0: i32, %arg1: memref<8x6xi32, #tpu.memory_space<smem>>) -> (i32, i32) {
    %c0_i32 = arith.constant 0 : i32
    %c0_i32_0 = arith.constant 0 : i32
    %c0_i32_1 = arith.constant 0 : i32
    return %c0_i32, %c0_i32_0 : i32, i32
  }
  func.func @transform_6(%arg0: i32, %arg1: memref<8x6xi32, #tpu.memory_space<smem>>) -> (i32, i32) {
    %c0_i32 = arith.constant 0 : i32
    %c0_i32_0 = arith.constant 0 : i32
    %c0_i32_1 = arith.constant 0 : i32
    return %c0_i32, %c0_i32_0 : i32, i32
  }
}

</mosaic_0001>

<bundles_post_ra>
// kernel: tree_forward.1
= control target key start
LH: loop header
LB: loop body
LE: loop exit
PB: predicated region body
PF: predicated region fallthrough
CT: control target
= control target key end

     0   :  { %s872_s0 = inlined_call_operand.vmem [shape: s32[8,6], index: 0, kind: input, shape index: {}]   ;;  %s873_s1 = inlined_call_operand.vmem [shape: f32[6,32], index: 1, kind: input, shape index: {}]   ;;  %s874_s2 = inlined_call_operand.hbm [shape: f32[64,128], index: 2, kind: input, shape index: {}]   ;;  %s875_s3 = inlined_call_operand.vmem [shape: f32[1,128], index: 3, kind: input, shape index: {}]   ;;  %s876_s4 = inlined_call_operand.vmem [shape: f32[32,8], index: 4, kind: input, shape index: {}]   ;;  %s877_s5 = inlined_call_operand.vmem [shape: f32[1,8], index: 5, kind: input, shape index: {}]   ;;  %s878_s6 = inlined_call_operand.hbm [shape: f32[8,64], index: 6, kind: output, shape index: {0}]   ;;  %s879_s7 = inlined_call_operand.hbm [shape: f32[1,8], index: 7, kind: output, shape index: {1}]  }
   0x1   :  { %s13_s26 = sshll.u32 %s872_s0, 4  ;;  %s14_s26 = int_to_ptr.vmem [resolvable:$true] %s13_s26 }
   0x2   :  { %s584_s27 = scalar_lea.vmem %s14_s26, 128  ;;  %p589_p1 = scmp.lt.s32.totalorder %s14_s26, %s14_s26 }
   0x3   :  { %p585_p0 = scmp.ne.s32.totalorder %s14_s26, %s584_s27  ;;  %p590_p2 = scmp.lt.s32.totalorder %s584_s27, %s584_s27 }
   0x5   :  { %p591_p3 = por %p590_p2, %p589_p1 }
   0x7   :  { %p592_p4 = pnand %p591_p3, %p585_p0 }
   0x9   :  { %595 = shalt.err (!%p592_p4)  }
   0xa   :  { %s678_s28 = smov [#allocation3]  }
   0xb   :  { %16 = dma.vmem_to_smem %s14_s26, 128, %s678_s28, [#allocation2] }
   0xc   :  { %666 = dma.done.wait [#allocation2], 128 }
   0xd   :  { %667 = vsyncadd [#allocation2], 4294967168 }
   0xe   :  { %18 = sfence }
   0xf   :  { %19 = vsyncpa [#allocation5], 0 }
  0x10   :  { %20 = vsyncpa [#allocation6], 0 }
  0x11   :  { %21 = vsyncpa [#allocation9], 0  ;;  %s679_s29 = smov [#allocation4]   ;;  %s596_s9 = scalar_lea.hbm %s874_s2, 1024 }
  0x12   :  { %s29_s30 = sshll.u32 %s679_s29, 4  ;;  %p597_p5 = scmp.ne.s32.totalorder %s874_s2, %s596_s9  ;;  %s30_s30 = int_to_ptr.vmem [resolvable:$true] %s29_s30 }
  0x13   :  { %p600_p6 = scmp.lt.u32.totalorder %s596_s9, %s874_s2 }
  0x15   :  { %p602_p7 = pnand %p600_p6, %p597_p5 }
  0x17   :  { %605 = shalt.err (!%p602_p7)
}
  0x18   :  { %s606_s14 = scalar_lea.vmem %s30_s30, 1024  ;;  %p611_p9 = scmp.lt.s32.totalorder %s30_s30, %s30_s30 }
  0x19   :  { %p607_p8 = scmp.ne.s32.totalorder %s30_s30, %s606_s14  ;;  %p612_p10 = scmp.lt.s32.totalorder %s606_s14, %s606_s14 }
  0x1b   :  { %p613_p11 = por %p612_p10, %p611_p9 }
  0x1d   :  { %p614_p12 = pnand %p613_p11, %p607_p8 }
  0x1f   :  { %617 = shalt.err (!%p614_p12)
}
  0x20   :  { %s680_s15 = smov 128   ;;  %s681_s16 = smov 8  }
  0x21   :  { %35 = dma.hbm_to_vmem [thread:$0]  %s874_s2, 1024, %s30_s30, [#allocation5], %s680_s15, %s680_s15, %s681_s16  }
  0x22   :  { %668 = dma.done.wait [#allocation5], 1024  }
  0x23   :  { %669 = vsyncadd [#allocation5], 4294966272  ;;  %vm45_vm0 = vcmask 523264   ;;  %v56_v0 = vlaneseq  ;;  %v682_v1 = vmov 0.0   ;;  %v752_v3 = vld [vmem:[#allocation4] sm:$0xff]  ;;  %v754_v4 = vld [vmem:[#allocation4 + $0x8] sm:$0xff] }
  0x24   :  { %46 = vst.msk [vmem:[#allocation7] sm:$0xff] %vm45_vm0, %v682_v1  ;;  %v756_v5 = vld [vmem:[#allocation4 + $0x10] sm:$0xff]  ;;  %v758_v6 = vld [vmem:[#allocation4 + $0x18] sm:$0xff]  ;;  %v760_v7 = vld [vmem:[#allocation4 + $0x20] sm:$0xff]  ;;  %s773_s20 = smov 0  }
  0x25   :  { %v749_v2 = vand.u32 127, %v56_v0  ;;  %v762_v8 = vld [vmem:[#allocation4 + $0x28] sm:$0xff]  ;;  %v764_v9 = vld [vmem:[#allocation4 + $0x30] sm:$0xff]  ;;  %v766_v10 = vld [vmem:[#allocation4 + $0x38] sm:$0xff] }
  0x26   :  { %v771_v11 = vld [vmem:[%s875_s3] sm:$0x1] }
  0x27   :  { %vm58_vm1 = vcmp.ge.s32.totalorder %v749_v2, 32 }
  0x28 LB: > { %v525_v12 = vpack.c.bf16 %v754_v4, %v752_v3  ;;  %v529_v13 = vpack.c.bf16 %v758_v6, %v756_v5  ;;  %s69_s21 = sld [smem:[#allocation3 + %s676_s20]]  ;;  %s72_s3 = sshra.s32 %s676_s20, 7  ;;  %v533_v14 = vpack.c.bf16 %v762_v8, %v760_v7  ;;  %v537_v15 = vpack.c.bf16 %v766_v10, %v764_v9  ;;  %s676_s20 = sphi %s773_s20, %s64_s20  }
  0x29   : > { %s785_s22 = sand.u32 127, %s676_s20  ;;  %s789_s23 = sshll.u32 %s72_s3, 7  ;;  %vm139_vm2 = vcmask 1040384   ;;  %vm141_vm3 = vcmask 1041408   ;;  %vm143_vm4 = vcmask 1042432   ;;  %vm145_vm5 = vcmask 1043456  }
  0x2a   : > { %526 = vmatprep.subr.bf16.mxu0 %v525_v12  ;;  %s467_s24 = sadd.s32 128, %s789_s23  ;;  %s469_s25 = sadd.s32 256, %s789_s23  ;;  %vm147_vm6 = vcmask 1044480   ;;  %vm149_vm7 = vcmask 1045504   ;;  %vm151_vm8 = vcmask 1046528   ;;  %vm67_vm9 = vcmask 261120  }
  0x2b   : > { %528 = vmatpush3.bf16.msra.mxu0 %v525_v12  ;;  %s78_s26 = sadd.s32 %s467_s24, %s785_s22  ;;  %s84_s27 = sadd.s32 %s469_s25, %s785_s22  ;;  %v255_v44 = vshrl.u32 %v56_v0, 7  ;;  %vm298_vm10 = vcmask 523520   ;;  %vm323_vm11 = vcmask 516096  }
  0x2c   : > { %530 = vmatprep.subr.bf16.mxu0 %v529_v13  ;;  %s79_s28 = sld [smem:[#allocation3 + %s78_s26]]  ;;  %s471_s30 = sadd.s32 384, %s789_s23 }
  0x2d   : > { %s85_s29 = sld [smem:[#allocation3 + %s84_s27]]  ;;  %s90_s0 = sadd.s32 %s471_s30, %s785_s22  ;;  %v256_v45 = vsub.s32 0, %v255_v44 }
  0x2e   : > { %s473_s8 = sadd.s32 512, %s789_s23  ;;  %s91_s9 = sld [smem:[#allocation3 + %s90_s0]] }
  0x2f   : > { %532 = vmatpush3.bf16.msra.mxu0 %v529_v13  ;;  %s96_s10 = sadd.s32 %s473_s8, %s785_s22  ;;  %s475_s12 = sadd.s32 640, %s789_s23  ;;  %v264_v51 = vrot.slane %v771_v11, %v256_v45 }
  0x30   : > { %534 = vmatprep.subr.bf16.mxu0 %v533_v14  ;;  %s97_s11 = sld [smem:[#allocation3 + %s96_s10]]  ;;  %s102_s13 = sadd.s32 %s475_s12, %s785_s22 }
  0x31   : > { %s477_s14 = sadd.s32 768, %s789_s23  ;;  %s70_s15 = scalar_lea.vmem [#allocation7], %s69_s21 }
  0x32   : > { %v71_v16 = vld [vmem:[%s70_s15] sm:$0x1]  ;;  %s80_s16 = scalar_lea.vmem [#allocation7], %s79_s28  ;;  %s103_s18 = sld [smem:[#allocation3 + %s102_s13]] }
  0x33   : > { %536 = vmatpush3.bf16.msra.mxu0 %v533_v14  ;;  %v81_v17 = vld [vmem:[%s80_s16] sm:$0x1]  ;;  %s86_s17 = scalar_lea.vmem [#allocation7], %s85_s29  ;;  %s108_s2 = sadd.s32 %s477_s14, %s785_s22 }
  0x34   : > { %538 = vmatprep.subr.bf16.mxu0 %v537_v15  ;;  %v87_v18 = vld [vmem:[%s86_s17] sm:$0x1]  ;;  %s109_s19 = sld [smem:[#allocation3 + %s108_s2]]  ;;  %s479_s3 = sadd.s32 896, %s789_s23  ;;  %v119_v19 = vrot.slane %v81_v17, 7 }
  0x35   : > { %v122_v20 = vrot.slane %v87_v18, 6  ;;  %s114_s24 = sadd.s32 %s479_s3, %s785_s22  ;;  %s92_s25 = scalar_lea.vmem [#allocation7], %s91_s9 }
  0x36   : > { %v93_v21 = vld [vmem:[%s92_s25] sm:$0x1]  ;;  %s115_s26 = sld [smem:[#allocation3 + %s114_s24]]  ;;  %v140_v22 = vsel %vm139_vm2, %v71_v16, %v119_v19  ;;  %s98_s21 = scalar_lea.vmem [#allocation7], %s97_s11 }
  0x37   : > { %540 = vmatpush3.bf16.msra.mxu0 %v537_v15  ;;  %v99_v23 = vld [vmem:[%s98_s21] sm:$0x1]  ;;  %v125_v24 = vrot.slane %v93_v21, 5  ;;  %v142_v25 = vsel %vm141_vm3, %v140_v22, %v122_v20  ;;  %s65_s28 = scalar_lea.vmem %s873_s1, %s676_s20  ;;  %s683_s0 = smov 32  }
  0x38   : > { %v128_v26 = vrot.slane %v99_v23, 4  ;;  %s104_s27 = scalar_lea.vmem [#allocation7], %s103_s18  ;;  %v66_v35 = vld [vmem:[%s65_s28] sm:$0x1]  ;;  %s684_s8 = smov 96  }
  0x39   : > { %v144_v27 = vsel %vm143_vm4, %v142_v25, %v125_v24  ;;  %v105_v28 = vld [vmem:[%s104_s27] sm:$0x1]  ;;  %v68_v39 = vsel %vm67_vm9, %v66_v35, 0.0  ;;  %s685_s9 = smov 64   ;;  %s322_s10 = scalar_lea.vmem [#allocation7], %s676_s20 }
  0x3a   : > { %v146_v29 = vsel %vm145_vm5, %v144_v27, %v128_v26  ;;  %s110_s29 = scalar_lea.vmem [#allocation7], %s109_s19  ;;  %v131_v31 = vrot.slane %v105_v28, 3  ;;  %s64_s20 = sadd.s32 1, %s676_s20  }
  0x3b   : > { %v111_v30 = vld [vmem:[%s110_s29] sm:$0x1]  ;;  %p61_p13 = scmp.ge.s32.totalorder %s64_s20, 6  }
  0x3c   : > { %v134_v32 = vrot.slane %v111_v30, 2  ;;  %s116_s30 = scalar_lea.vmem [#allocation7], %s115_s26  ;;  %v148_v34 = vsel %vm147_vm6, %v146_v29, %v131_v31  ;;  %s686_s15 = smov (%p61_p13), 96   ;;  %v329_v0 = vld [vmem:[%s876_s4 + $0x18] sm:$0xff] (%p61_p13)  ;;  %vm688_vm12 = vmmov (%p61_p13), 0  }
  0x3d   : > { %v117_v33 = vld [vmem:[%s116_s30] sm:$0x1]  ;;  %s689_s1 = smov (%p61_p13), [#allocation7]  }
  0x3e   : > { %v137_v36 = vrot.slane %v117_v33, 1  ;;  %v150_v37 = vsel %vm149_vm7, %v148_v34, %v134_v32  ;;  %s415_s2 = sshll.u32 (%p61_p13), %s689_s1, 4  ;;  %s416_s2 = int_to_ptr.vmem [resolvable:$true] %s415_s2 }
  0x3f   :  { %s618_s19 = scalar_lea.vmem (%p61_p13), %s416_s2, 128  ;;  %p623_p1 = scmp.lt.s32.totalorder (%p61_p13), %s416_s2, %s416_s2 }
  0x40   : > { %v152_v38 = vsel %vm151_vm8, %v150_v37, %v137_v36  ;;  %p619_p0 = scmp.ne.s32.totalorder (%p61_p13), %s416_s2, %s618_s19  ;;  %p624_p2 = scmp.lt.s32.totalorder (%p61_p13), %s618_s19, %s618_s19 }
  0x41   : > { %v153_v40 = vsel %vm58_vm1, %v152_v38, 0.0  ;;  %v286_v41 = vrot.slane %v152_v38, 7 }
  0x42   : > { %v155_v42 = vrot.slane %v153_v40, 7  ;;  %p625_p3 = por (%p61_p13), %p624_p2, %p623_p1 }
  0x43   : > { %287 = vrot.lane.b32.xlu0 %v286_v41, %s683_s0 }
  0x44   : > { %v157_v43 = vsel %vm139_vm2, %v68_v39, %v155_v42  ;;  %p626_p4 = pnand (%p61_p13), %p625_p3, %p619_p0 }
  0x45   : > { %511 = vmatprep.mubr.msk.f32.mxu0 %vm45_vm0, %v157_v43 }
  0x46   : > { %512 = vmatmul.mubr.msk.f32.vlgmr.msra.gmra.mrb[0].mxu0 %vm45_vm0, %v155_v42 }
  0x47   :  { %522 = vmatprep.mubr.msk.f32.mxu0 (%p61_p13), %vm688_vm12, %v682_v1 }
  0xb5   : > { %v288_v18 = vpop.permute.xlu0 %287 }
 0x119   : > { %v513_v46 = vpop.f32.mrb[0].mxu0 }
 0x11a   : > { %v238_v47 = vsel %vm139_vm2, %v513_v46, 0.0  ;;  %v229_v48 = vpop.f32.mrb[1].mxu0 }
 0x11b   : > { %v239_v49 = vadd.f32 %v238_v47, %v229_v48  ;;  %v257_v50 = vrot.slane %v229_v48, %v256_v45  ;;  %v326_v47 = vld [vmem:[%s876_s4] sm:$0xff] (%p61_p13) }
 0x11d   : > { %v240_v52 = vrot.slane %v239_v49, 4  ;;  %v258_v53 = vadd.f32 %v257_v50, %v229_v48  ;;  %v259_v54 = vadd.f32 %v513_v46, %v257_v50  ;;  %v327_v48 = vld [vmem:[%s876_s4 + $0x8] sm:$0xff] (%p61_p13) }
 0x11e   :  { %v542_v50 = vpack.c.bf16 (%p61_p13), %v327_v48, %v326_v47 }
 0x11f   : > { %v241_v55 = vadd.f32 %v240_v52, %v239_v49  ;;  %v266_v56 = vadd.f32 %v264_v51, %v258_v53  ;;  %v267_v57 = vadd.f32 %v264_v51, %v259_v54  ;;  %v687_v49 = vmov (%p61_p13), 0.0|0.0   ;;  %v328_v51 = vld [vmem:[%s876_s4 + $0x10] sm:$0xff] (%p61_p13) }
 0x120   :  { %541 = vmatprep.subr.bf16.mxu0 (%p61_p13), %v687_v49  ;;  %v545_v2 = vpack.c.bf16 (%p61_p13), %v329_v0, %v328_v51 }
 0x121   : > { %v242_v58 = vrot.slane %v241_v55, 2  ;;  %v463_v59 = vmul.f32 -1.442695, %v266_v56  ;;  %v464_v60 = vmul.f32 -1.442695, %v267_v57  ;;  %543 = vmatpush3.bf16.msra.mxu0 (%p61_p13), %v542_v50 }
 0x122   :  { %544 = vmatprep.subr.bf16.mxu0 (%p61_p13), %v687_v49 }
 0x123   : > { %v243_v61 = vadd.f32 %v242_v58, %v241_v55  ;;  %568 = vpow2.f32 %v463_v59 }
 0x124   : > { %570 = vpow2.f32 %v464_v60 }
 0x125   : > { %v244_v62 = vrot.slane %v243_v61, 1  ;;  %546 = vmatpush3.bf16.msra.mxu0 (%p61_p13), %v545_v2 }
 0x127   : > { %v245_v63 = vadd.f32 %v244_v62, %v243_v61 }
 0x129   : > { %v246_v12 = vadd.f32 %v245_v63, %v771_v11 }
 0x12b   : > { %572 = vtanh.f32 %v246_v12  ;;  %v462_v33 = vmul.f32 -1.442695, %v246_v12 }
 0x12d   : > { %v569_v13 = vpop.eup %568 }
 0x12e   : > { %v571_v14 = vpop.eup %570  ;;  %v274_v15 = vadd.f32 1.0, %v569_v13 }
 0x12f   : > { %v275_v16 = vadd.f32 1.0, %v571_v14 }
 0x130   : > { %574 = vrcp.f32 %v274_v15 }
 0x131   : > { %576 = vrcp.f32 %v275_v16 }
 0x132   : > { %578 = vpow2.f32 %v462_v33 }
 0x135   : > { %v573_v17 = vpop.eup %572 }
 0x136   : > { %281 = vrot.lane.b32.xlu0 %v573_v17, %s683_s0 }
 0x13a   : > { %v575_v19 = vpop.eup %574 }
 0x13b   : > { %v577_v20 = vpop.eup %576  ;;  %v290_v21 = vmul.f32 %v575_v19, %v288_v18 }
 0x13c   : > { %v291_v22 = vmul.f32 %v577_v20, %v288_v18  ;;  %v579_v34 = vpop.eup %578 }
 0x13d   : > { %v294_v23 = vrot.slane %v290_v21, 1  ;;  %v250_v35 = vadd.f32 1.0, %v579_v34 }
 0x13e   : > { %v295_v24 = vrot.slane %v291_v22, 1 }
 0x13f   : > { %580 = vrcp.f32 %v250_v35 }
 0x140   : > { %v296_v25 = vsel %vm151_vm8, %v294_v23, %v295_v24 }
 0x141   : > { %v299_v26 = vsel %vm298_vm10, %v296_v25, 0.0 }
 0x142   : > { %v300_v27 = vrot.slane %v299_v26, 4 }
 0x144   : > { %v301_v28 = vadd.f32 %v300_v27, %v299_v26 }
 0x146   : > { %v302_v29 = vrot.slane %v301_v28, 2 }
 0x148   : > { %v303_v30 = vadd.f32 %v302_v29, %v301_v28 }
 0x149   : > { %v581_v37 = vpop.eup %580 }
 0x14a   : > { %v304_v31 = vrot.slane %v303_v30, 1 }
 0x14c   : > { %v305_v32 = vadd.f32 %v304_v31, %v303_v30 }
 0x14e   : > { %307 = vrot.lane.b32.xlu1 %v305_v32, %s684_s8 }
 0x1a8   : > { %v282_v36 = vpop.permute.xlu0 %281 }
 0x1a9   : > { %v284_v38 = vmul.f32 %v581_v37, %v282_v36 }
 0x1c0   : > { %v308_v39 = vpop.permute.xlu1 %307 }
 0x1c1   : > { %v310_v40 = vadd.f32 %v308_v39, %v284_v38 }
 0x1c3   : > { %582 = vtanh.f32 %v310_v40 }
 0x1cd   : > { %v583_v41 = vpop.eup %582 }
 0x1ce   : > { %313 = vrot.lane.b32.xlu1 %v583_v41, %s685_s9 }
 0x240   : > { %v314_v42 = vpop.permute.xlu1 %313 }
 0x241   : > { %v316_v43 = vmul.f32 %v581_v37, %v314_v42 }
 0x243   : > { %318 = vrot.lane.b32.xlu0 %v316_v43, %s684_s8 }
 0x2b1   :  { %63 = sbr.rel (!%p61_p13) target bundleno = 40 (0x28), region = 69 }
 0x2b5   : > { %v319_v44 = vpop.permute.xlu0 %318 }
 0x2b6   : > { %v321_v45 = vsel %vm67_vm9, %v310_v40, %v319_v44 }
 0x2b7   : > { %324 = vst.msk [vmem:[%s322_s10] sm:$0x1] %vm323_vm11, %v321_v45 }
 0x2be   :  { %v325_v46 = vld [vmem:[#allocation7 + $0x5] sm:$0x1] }
 0x2bf   :  { %332 = vrot.lane.b32.xlu0 %v325_v46, %s686_s15 }
 0x331   :  { %v333_v3 = vpop.permute.xlu0 %332 }
 0x332   :  { %523 = vmatmul.mubr.msk.f32.vlgmr.msra.gmra.mrb[0].mxu0 %vm67_vm9, %v333_v3 }
 0x333   :  { %629 = shalt.err (!%p626_p4)
}
 0x334   :  { %s630_s24 = scalar_lea.hbm %s878_s6, 128 }
 0x335   :  { %p631_p5 = scmp.ne.s32.totalorder %s878_s6, %s630_s24  ;;  %p634_p6 = scmp.lt.u32.totalorder %s630_s24, %s878_s6 }
 0x337   :  { %p636_p7 = pnand %p634_p6, %p631_p5 }
 0x339   :  { %639 = shalt.err (!%p636_p7)
}
 0x33a   :  { %418 = dma.vmem_to_hbm [thread:$0]  %s416_s2, 128, %s878_s6, [#allocation6]   ;;  %v330_v1 = vld [vmem:[%s877_s5] sm:$0x1]  ;;  %vm407_vm13 = vcmask 57344  }
 0x33b   :  { %s690_s30 = smov [#allocation8]  }
 0x33c   :  { %s425_s0 = sshll.u32 %s690_s30, 4  ;;  %s426_s0 = int_to_ptr.vmem [resolvable:$true] %s425_s0 }
 0x33d   :  { %s640_s8 = scalar_lea.vmem %s426_s0, 16  ;;  %s644_s9 = scalar_lea.vmem %s426_s0, 32 }
 0x33e   :  { %p641_p8 = scmp.ne.s32.totalorder %s426_s0, %s640_s8  ;;  %p645_p9 = scmp.lt.s32.totalorder %s426_s0, %s426_s0 }
 0x33f   :  { %p646_p10 = scmp.lt.s32.totalorder %s644_s9, %s640_s8 }
 0x341   :  { %p647_p11 = por %p646_p10, %p645_p9 }
 0x343   :  { %p648_p12 = pnand %p647_p11, %p641_p8 }
 0x405   :  { %v403_v4 = vpop.f32.mrb[0].mxu0 }
 0x406   :  { %v404_v5 = vadd.f32 %v403_v4, %v330_v1  ;;  %v524_v6 = vpop.f32.mrb[1].mxu0 }
 0x408   :  { %408 = vst.msk [vmem:[#allocation8] sm:$0x1] %vm407_vm13, %v404_v5 }
 0x409   :  { %651 = shalt.err (!%p648_p12)
}
 0x40a   :  { %s652_s5 = scalar_lea.hbm %s879_s7, 16 }
 0x40b   :  { %p653_p13 = scmp.ne.s32.totalorder %s879_s7, %s652_s5  ;;  %p656_p0 = scmp.lt.u32.totalorder %s652_s5, %s879_s7 }
 0x40d   :  { %p658_p1 = pnand %p656_p0, %p653_p13 }
 0x40f   :  { %661 = shalt.err (!%p658_p1)
}
 0x410   :  { %428 = dma.vmem_to_hbm [thread:$0]  %s426_s0, 16, %s879_s7, [#allocation9]  }
 0x411   :  { %670 = dma.done.wait [#allocation6], 128  }
 0x412   :  { %671 = vsyncadd [#allocation6], 4294967168 }
 0x413   :  { %672 = dma.done.wait [#allocation9], 16  }
 0x414   :  { %673 = vsyncadd [#allocation9], 4294967280 }
 0x415   :  { %435 = vsyncpa [#allocation5], 1 }
 0x416   :  { %436 = vsyncpa [#allocation6], 1 }
 0x417   :  { %437 = vsyncpa [#allocation9], 1 }

</bundles_post_ra>
